<compile_context>
chip_gen: v7x
topology: tpu7x:2x2x1
jax: 0.10.0
libtpu: 0.0.40
codegen_flags: <defaults>
</compile_context>

<pallas_src>
import functools

import numpy as np

import jax
import jax.numpy as jnp
from jax.experimental import pallas as pl
from jax.experimental.pallas import tpu as pltpu


def _ce_kernel(n_valid, c_total, tile_c, c_padded, has_weight, *refs):
    if has_weight:
        logits_ref, tgt_ref, wrow_ref, out_ref, m_sc, l_sc, t_sc = refs
    else:
        logits_ref, tgt_ref, out_ref, m_sc, l_sc, t_sc = refs
        wrow_ref = None

    ri = pl.program_id(0)          # row-tile index ("parallel")
    ci = pl.program_id(1)          # class-tile index ("arbitrary" reduction)
    nc = pl.num_programs(1)

    # Init online-logsumexp accumulators at the start of each row tile.
    @pl.when(ci == 0)
    def _():
        m_sc[...] = jnp.full_like(m_sc, -jnp.inf)
        l_sc[...] = jnp.zeros_like(l_sc)
        t_sc[...] = jnp.zeros_like(t_sc)

    x = logits_ref[...]                                     # [T, Ct] native dtype
    tgt = tgt_ref[...]                                      # [T, 1] int32
    t, ct = x.shape

    # Global column indices for this class tile: [1, Ct] iota, broadcasts vs tgt.
    col = ci * tile_c + jax.lax.broadcasted_iota(jnp.int32, (1, ct), 1)

    if c_padded:
        # Last class tile reads past C: kill garbage columns before max / exp.
        x = jnp.where(col < c_total, x, jnp.array(-jnp.inf, dtype=x.dtype))

    onehot = col == tgt                                     # [T, Ct] (broadcast)

    # Row max on the native dtype (exact for bf16), then f32 online update.
    row_max = jnp.max(x, axis=-1, keepdims=True).astype(jnp.float32)   # [T, 1]
    m_old = m_sc[...]
    m_new = jnp.maximum(m_old, row_max)
    p_sum = jnp.sum(jnp.exp(x.astype(jnp.float32) - m_new),
                    axis=-1, keepdims=True)                 # [T, 1]
    l_sc[...] = jnp.exp(m_old - m_new) * l_sc[...] + p_sum
    m_sc[...] = m_new

    # Target-logit contribution from this class tile (0 if target not in tile).
    t_sc[...] += jnp.sum(jnp.where(onehot, x, 0.0),
                         axis=-1, keepdims=True).astype(jnp.float32)

    # Finalize: per-row CE, mask padded rows, write one lane-dense partial block.
    @pl.when(ci == nc - 1)
    def _():
        ce = m_sc[...] + jnp.log(l_sc[...]) - t_sc[...]     # [T, 1]
        row = ri * t + jax.lax.broadcasted_iota(jnp.int32, (t, 1), 0)
        valid = row < n_valid
        ce = jnp.where(valid, ce, 0.0)
        if has_weight:
            wrow = jnp.where(valid, wrow_ref[...], 0.0)     # [T, 1]
            loss_tile = jnp.sum(ce * wrow, axis=(0, 1), keepdims=True)   # (1, 1)
            wsum_tile = jnp.sum(wrow, axis=(0, 1), keepdims=True)        # (1, 1)
            packed = jnp.concatenate([loss_tile, wsum_tile], axis=0)     # (2, 1)
            out_ref[...] = jnp.broadcast_to(packed[None], out_ref.shape)  # (1,2,128)
        else:
            loss_tile = jnp.sum(ce, axis=(0, 1), keepdims=True)          # (1, 1)
            out_ref[...] = jnp.broadcast_to(loss_tile[None], out_ref.shape)


def _vmem_capacity_bytes():
    """Per-core VMEM capacity; conservative fallback if the query is unavailable."""
    try:
        info = pltpu.get_tpu_info()
        cap = getattr(info, "vmem_capacity_bytes", None)
        if cap:
            return int(cap)
    except Exception:
        pass
    return 64 * 1024 * 1024      # v7x per-TensorCore VMEM (smallest of the family)


def _pick_tiles(n, c, itemsize, vmem_cap):
    """Generation-aware (tile_n, tile_c): biggest tiles that fit the working set.

    Working set per step ~ 2x double-buffered native-dtype input tile plus ~3
    tile-wide f32 temporaries (exp argument, select, exp result).
    """
    budget = int(vmem_cap * 0.55)    # headroom for outputs, scratch, compiler temps

    def max_rows_for(ct):
        per_row = 2 * ct * itemsize + 3 * ct * 4
        return budget // max(1, per_row)

    # Class-axis tiling only when a full-width row tile would drop below ~256 rows.
    tile_c = c
    if c > 2048 and max_rows_for(c) < 256:
        tile_c = 2048
        while tile_c > 128 and max_rows_for(tile_c) < 256:
            tile_c //= 2
        if tile_c >= c:
            tile_c = c

    max_rows = max(8, int(max_rows_for(tile_c)))
    max_rows = min(max_rows, 4096)   # beyond a few thousand rows/step there is no gain

    tile_n = min(n, max_rows)
    if tile_n < n:
        tile_n = max(8, (tile_n // 8) * 8)

    # Keep the row grid multi-step so megacore sharding + pipelining engage (v7x).
    min_tiles = 4 if n >= 64 else (2 if n >= 16 else 1)
    if min_tiles > 1 and -(-n // tile_n) < min_tiles:
        tile_n = ((-(-n // min_tiles) + 7) // 8) * 8
        tile_n = min(tile_n, n)

    return tile_n, tile_c


def cross_entropy_pallas(logits, target, weight=None, tile_n=None, tile_c=None):
    """Equivalent of torch.nn.functional.cross_entropy(logits, target, weight)."""
    n, c = logits.shape
    itemsize = jnp.dtype(logits.dtype).itemsize
    vmem_cap = _vmem_capacity_bytes()

    auto_tn, auto_tc = _pick_tiles(n, c, itemsize, vmem_cap)
    if tile_n is None:
        tile_n = auto_tn
    if tile_c is None:
        tile_c = auto_tc

    num_row_tiles = pl.cdiv(n, tile_n)
    num_c_tiles = pl.cdiv(c, tile_c)
    c_padded = (num_c_tiles * tile_c != c)
    has_weight = weight is not None

    target2d = target.astype(jnp.int32).reshape(n, 1)
    inputs = [logits, target2d]
    in_specs = [
        pl.BlockSpec((tile_n, tile_c), lambda i, j: (i, j)),   # stream logits (native dtype)
        pl.BlockSpec((tile_n, 1), lambda i, j: (i, 0)),        # int32 targets
    ]

    n_bytes = n * c * itemsize + n * 4
    if has_weight:
        # O(N) gather outside the kernel replaces the O(N*C) in-kernel select.
        w_row = jnp.asarray(weight, jnp.float32)[target.astype(jnp.int32)].reshape(n, 1)
        inputs.append(w_row)
        in_specs.append(pl.BlockSpec((tile_n, 1), lambda i, j: (i, 0)))
        n_bytes += n * 4

    rows_out = 2 if has_weight else 1                          # loss (+ wsum) packed
    out_shape = jax.ShapeDtypeStruct((num_row_tiles, rows_out, 128), jnp.float32)
    out_spec = pl.BlockSpec((1, rows_out, 128), lambda i, j: (i, 0, 0))
    n_bytes += num_row_tiles * rows_out * 128 * 4

    partial = pl.pallas_call(
        functools.partial(_ce_kernel, n, c, tile_c, c_padded, has_weight),
        grid=(num_row_tiles, num_c_tiles),
        in_specs=in_specs,
        out_specs=out_spec,
        out_shape=out_shape,
        scratch_shapes=[pltpu.VMEM((tile_n, 1), jnp.float32)] * 3,   # m, l, tgt-logit
        compiler_params=pltpu.CompilerParams(
            dimension_semantics=("parallel", "arbitrary"),
            vmem_limit_bytes=int(vmem_cap * 0.9)),
        cost_estimate=pl.CostEstimate(
            flops=5 * n * c,
            transcendentals=n * c,
            bytes_accessed=n_bytes),
    )(*inputs)

    if has_weight:
        return jnp.sum(partial[:, 0, 0]) / jnp.sum(partial[:, 1, 0])
    return jnp.sum(partial[:, 0, 0]) / n


def _ce_reference(logits, target, weight=None):
    """Pure-JAX reference matching torch F.cross_entropy(reduction='mean')."""
    logp = jax.nn.log_softmax(logits.astype(jnp.float32), axis=-1)
    ce = -jnp.take_along_axis(logp, target[:, None].astype(jnp.int32), axis=-1)[:, 0]
    if weight is not None:
        w = jnp.asarray(weight, jnp.float32)[target]
        return jnp.sum(ce * w) / jnp.sum(w)
    return jnp.mean(ce)


if __name__ == "__main__":
    key = jax.random.PRNGKey(0)
    k1, k2, k3, k4, k5, k6 = jax.random.split(key, 6)

    # Module-shaped small case: batch=8 logits over 16 classes.
    N, C = 8, 16
    logits = jax.random.normal(k1, (N, C), dtype=jnp.float32)
    target = jax.random.randint(k2, (N,), 0, C, dtype=jnp.int32)

    # Module default: reweight_CE=False -> weight=None.
    loss = jax.block_until_ready(cross_entropy_pallas(logits, target))
    ref = _ce_reference(logits, target)
    assert jnp.allclose(loss, ref, atol=1e-5, rtol=1e-5), (loss, ref)

    # reweight_CE=True path: effective-number per-class weights (as in the module).
    cls_num_list = np.array([(i % 5 + 1) * 10 for i in range(C)], dtype=np.float64)
    beta = 0.9999
    effective_num = 1.0 - np.power(beta, cls_num_list)
    per_cls_weights = (1.0 - beta) / effective_num
    per_cls_weights = per_cls_weights / per_cls_weights.sum() * C
    w = jnp.asarray(per_cls_weights, jnp.float32)

    loss_w = jax.block_until_ready(cross_entropy_pallas(logits, target, weight=w))
    ref_w = _ce_reference(logits, target, weight=w)
    assert jnp.allclose(loss_w, ref_w, atol=1e-5, rtol=1e-5), (loss_w, ref_w)

    # Multi-row-tile case with a padded last row tile (exercises row masking).
    N2 = 20
    logits2 = jax.random.normal(k3, (N2, C), dtype=jnp.float32)
    target2 = jax.random.randint(k4, (N2,), 0, C, dtype=jnp.int32)
    loss2 = jax.block_until_ready(
        cross_entropy_pallas(logits2, target2, weight=w, tile_n=8))
    ref2 = _ce_reference(logits2, target2, weight=w)
    assert jnp.allclose(loss2, ref2, atol=1e-5, rtol=1e-5), (loss2, ref2)

    # Class-tiled online-logsumexp path with a padded last C-tile, bf16 logits.
    N3, C3 = 24, 160
    logits3 = jax.random.normal(k5, (N3, C3), dtype=jnp.float32).astype(jnp.bfloat16)
    target3 = jax.random.randint(k6, (N3,), 0, C3, dtype=jnp.int32)
    w3 = jnp.ones((C3,), jnp.float32).at[::3].set(2.0)

    loss3 = jax.block_until_ready(
        cross_entropy_pallas(logits3, target3, weight=w3, tile_n=8, tile_c=128))
    ref3 = _ce_reference(logits3, target3, weight=w3)
    assert jnp.allclose(loss3, ref3, atol=2e-3, rtol=2e-3), (loss3, ref3)

    loss3u = jax.block_until_ready(
        cross_entropy_pallas(logits3, target3, tile_n=8, tile_c=128))
    ref3u = _ce_reference(logits3, target3)
    assert jnp.allclose(loss3u, ref3u, atol=2e-3, rtol=2e-3), (loss3u, ref3u)

    print("KERNEL_OK")
</pallas_src>

<mosaic_0001>
module attributes {stable_mosaic.version = 11 : i64} {
  func.func @_ce_kernel(%arg0: i32, %arg1: i32, %arg2: memref<8x16xf32, #tpu.memory_space<vmem>>, %arg3: memref<8x1xi32, #tpu.memory_space<vmem>>, %arg4: memref<1x1x128xf32, #tpu.memory_space<vmem>>, %arg5: memref<8x1xf32, #tpu.memory_space<vmem>>, %arg6: memref<8x1xf32, #tpu.memory_space<vmem>>, %arg7: memref<8x1xf32, #tpu.memory_space<vmem>>) attributes {dimension_semantics = [#tpu.dimension_semantics<parallel>, #tpu.dimension_semantics<arbitrary>], iteration_bounds = array<i64: 1, 1>, scalar_prefetch = 0 : i64, scratch_operands = 3 : i64, tpu.core_type = #tpu.core_type<tc>, window_params = [{transform_indices = @transform_0, window_bounds = array<i64: 8, 16>}, {transform_indices = @transform_1, window_bounds = array<i64: 8, 1>}, {transform_indices = @transform_2, window_bounds = array<i64: 1, 1, 128>}]} {
    %c0_i32 = arith.constant 0 : i32
    %0 = arith.cmpi eq, %arg1, %c0_i32 : i32
    %1 = arith.extui %0 : i1 to i32
    %c0_i32_0 = arith.constant 0 : i32
    %2 = arith.cmpi ne, %1, %c0_i32_0 : i32
    scf.if %2 {
      %cst_21 = arith.constant 0xFF800000 : f32
      %38 = vector.broadcast %cst_21 : f32 to vector<8x1xf32>
      %c0_22 = arith.constant 0 : index
      %c0_23 = arith.constant 0 : index
      %39 = vector.load %arg5[%c0_22, %c0_23] : memref<8x1xf32, #tpu.memory_space<vmem>>, vector<8x1xf32>
      tpu.vector_store %arg5[%c0_22, %c0_23], %38 {strides = array<i32>} : memref<8x1xf32, #tpu.memory_space<vmem>>, vector<8x1xf32>,
      %cst_24 = arith.constant 0.000000e+00 : f32
      %40 = vector.broadcast %cst_24 : f32 to vector<8x1xf32>
      %c0_25 = arith.constant 0 : index
      %c0_26 = arith.constant 0 : index
      %41 = vector.load %arg6[%c0_25, %c0_26] : memref<8x1xf32, #tpu.memory_space<vmem>>, vector<8x1xf32>
      tpu.vector_store %arg6[%c0_25, %c0_26], %40 {strides = array<i32>} : memref<8x1xf32, #tpu.memory_space<vmem>>, vector<8x1xf32>,
      %cst_27 = arith.constant 0.000000e+00 : f32
      %42 = vector.broadcast %cst_27 : f32 to vector<8x1xf32>
      %c0_28 = arith.constant 0 : index
      %c0_29 = arith.constant 0 : index
      %43 = vector.load %arg7[%c0_28, %c0_29] : memref<8x1xf32, #tpu.memory_space<vmem>>, vector<8x1xf32>
      tpu.vector_store %arg7[%c0_28, %c0_29], %42 {strides = array<i32>} : memref<8x1xf32, #tpu.memory_space<vmem>>, vector<8x1xf32>,
    } else {
    }
    %c0 = arith.constant 0 : index
    %c0_1 = arith.constant 0 : index
    %3 = vector.load %arg2[%c0, %c0_1] : memref<8x16xf32, #tpu.memory_space<vmem>>, vector<8x16xf32>
    %c0_2 = arith.constant 0 : index
    %c0_3 = arith.constant 0 : index
    %4 = vector.load %arg3[%c0_2, %c0_3] : memref<8x1xi32, #tpu.memory_space<vmem>>, vector<8x1xi32>
    %c16_i32 = arith.constant 16 : i32
    %5 = arith.muli %arg1, %c16_i32 : i32
    %6 = tpu.iota {dimensions = array<i32: 1>} : vector<1x16xi32>
    %7 = vector.broadcast %5 : i32 to vector<1x16xi32>
    %8 = arith.addi %7, %6 : vector<1x16xi32>
    %9 = vector.broadcast %8 : vector<1x16xi32> to vector<8x16xi32>
    %10 = vector.broadcast %4 : vector<8x1xi32> to vector<8x16xi32>
    %11 = arith.cmpi eq, %9, %10 : vector<8x16xi32>
    %cst = arith.constant dense<0xFF800000> : vector<8xf32>
    %12 = vector.multi_reduction <maximumf>, %3, %cst [1] : vector<8x16xf32> to vector<8xf32>
    %13 = vector.shape_cast %12 : vector<8xf32> to vector<8x1xf32>
    %c0_4 = arith.constant 0 : index
    %c0_5 = arith.constant 0 : index
    %14 = vector.load %arg5[%c0_4, %c0_5] : memref<8x1xf32, #tpu.memory_space<vmem>>, vector<8x1xf32>
    %15 = arith.maximumf %14, %13 : vector<8x1xf32>
    %16 = vector.broadcast %15 : vector<8x1xf32> to vector<8x16xf32>
    %17 = arith.subf %3, %16 : vector<8x16xf32>
    %18 = math.exp %17 : vector<8x16xf32>
    %cst_6 = arith.constant dense<0.000000e+00> : vector<8xf32>
    %19 = vector.multi_reduction <add>, %18, %cst_6 [1] : vector<8x16xf32> to vector<8xf32>
    %20 = vector.shape_cast %19 : vector<8xf32> to vector<8x1xf32>
    %21 = arith.subf %14, %15 : vector<8x1xf32>
    %22 = math.exp %21 : vector<8x1xf32>
    %c0_7 = arith.constant 0 : index
    %c0_8 = arith.constant 0 : index
    %23 = vector.load %arg6[%c0_7, %c0_8] : memref<8x1xf32, #tpu.memory_space<vmem>>, vector<8x1xf32>
    %24 = arith.mulf %22, %23 : vector<8x1xf32>
    %25 = arith.addf %24, %20 : vector<8x1xf32>
    %c0_9 = arith.constant 0 : index
    %c0_10 = arith.constant 0 : index
    %26 = vector.load %arg6[%c0_9, %c0_10] : memref<8x1xf32, #tpu.memory_space<vmem>>, vector<8x1xf32>
    tpu.vector_store %arg6[%c0_9, %c0_10], %25 {strides = array<i32>} : memref<8x1xf32, #tpu.memory_space<vmem>>, vector<8x1xf32>,
    %c0_11 = arith.constant 0 : index
    %c0_12 = arith.constant 0 : index
    %27 = vector.load %arg5[%c0_11, %c0_12] : memref<8x1xf32, #tpu.memory_space<vmem>>, vector<8x1xf32>
    tpu.vector_store %arg5[%c0_11, %c0_12], %15 {strides = array<i32>} : memref<8x1xf32, #tpu.memory_space<vmem>>, vector<8x1xf32>,
    %c0_13 = arith.constant 0 : index
    %c0_14 = arith.constant 0 : index
    %28 = vector.load %arg7[%c0_13, %c0_14] : memref<8x1xf32, #tpu.memory_space<vmem>>, vector<8x1xf32>
    %cst_15 = arith.constant 0.000000e+00 : f32
    %29 = vector.broadcast %cst_15 : f32 to vector<8x16xf32>
    %30 = arith.select %11, %3, %29 : vector<8x16xi1>, vector<8x16xf32>
    %cst_16 = arith.constant dense<0.000000e+00> : vector<8xf32>
    %31 = vector.multi_reduction <add>, %30, %cst_16 [1] : vector<8x16xf32> to vector<8xf32>
    %32 = vector.shape_cast %31 : vector<8xf32> to vector<8x1xf32>
    %33 = arith.addf %28, %32 : vector<8x1xf32>
    %c0_17 = arith.constant 0 : index
    %c0_18 = arith.constant 0 : index
    %34 = vector.load %arg7[%c0_17, %c0_18] : memref<8x1xf32, #tpu.memory_space<vmem>>, vector<8x1xf32>
    tpu.vector_store %arg7[%c0_17, %c0_18], %33 {strides = array<i32>} : memref<8x1xf32, #tpu.memory_space<vmem>>, vector<8x1xf32>,
    %c0_i32_19 = arith.constant 0 : i32
    %35 = arith.cmpi eq, %arg1, %c0_i32_19 : i32
    %36 = arith.extui %35 : i1 to i32
    %c0_i32_20 = arith.constant 0 : i32
    %37 = arith.cmpi ne, %36, %c0_i32_20 : i32
    scf.if %37 {
      %c0_21 = arith.constant 0 : index
      %c0_22 = arith.constant 0 : index
      %38 = vector.load %arg5[%c0_21, %c0_22] : memref<8x1xf32, #tpu.memory_space<vmem>>, vector<8x1xf32>
      %c0_23 = arith.constant 0 : index
      %c0_24 = arith.constant 0 : index
      %39 = vector.load %arg6[%c0_23, %c0_24] : memref<8x1xf32, #tpu.memory_space<vmem>>, vector<8x1xf32>
      %40 = math.log %39 : vector<8x1xf32>
      %41 = arith.addf %38, %40 : vector<8x1xf32>
      %c0_25 = arith.constant 0 : index
      %c0_26 = arith.constant 0 : index
      %42 = vector.load %arg7[%c0_25, %c0_26] : memref<8x1xf32, #tpu.memory_space<vmem>>, vector<8x1xf32>
      %43 = arith.subf %41, %42 : vector<8x1xf32>
      %c8_i32 = arith.constant 8 : i32
      %44 = arith.muli %arg0, %c8_i32 : i32
      %45 = tpu.iota {dimensions = array<i32: 0>} : vector<8x1xi32>
      %46 = vector.broadcast %44 : i32 to vector<8x1xi32>
      %47 = arith.addi %46, %45 : vector<8x1xi32>
      %c8_i32_27 = arith.constant 8 : i32
      %48 = vector.broadcast %c8_i32_27 : i32 to vector<8x1xi32>
      %49 = arith.cmpi slt, %47, %48 : vector<8x1xi32>
      %cst_28 = arith.constant 0.000000e+00 : f32
      %50 = vector.broadcast %cst_28 : f32 to vector<8x1xf32>
      %51 = arith.select %49, %43, %50 : vector<8x1xi1>, vector<8x1xf32>
      %52 = vector.shape_cast %51 : vector<8x1xf32> to vector<1x8x1xf32>
      %cst_29 = arith.constant dense<0.000000e+00> : vector<1xf32>
      %53 = vector.multi_reduction <add>, %52, %cst_29 [1, 2] : vector<1x8x1xf32> to vector<1xf32>
      %54 = vector.shape_cast %53 : vector<1xf32> to vector<1x1x1xf32>
      %55 = vector.extract %54[0, 0, 0] : f32 from vector<1x1x1xf32>
      %56 = vector.broadcast %55 : f32 to vector<1x1xf32>
      %57 = vector.shape_cast %56 : vector<1x1xf32> to vector<1x1x1xf32>
      %58 = vector.shape_cast %57 : vector<1x1x1xf32> to vector<1x1x1xf32>
      %59 = vector.broadcast %58 : vector<1x1x1xf32> to vector<1x1x128xf32>
      %c0_30 = arith.constant 0 : index
      %c0_31 = arith.constant 0 : index
      %c0_32 = arith.constant 0 : index
      %60 = vector.load %arg4[%c0_30, %c0_31, %c0_32] : memref<1x1x128xf32, #tpu.memory_space<vmem>>, vector<1x1x128xf32>
      tpu.vector_store %arg4[%c0_30, %c0_31, %c0_32], %59 {strides = array<i32>} : memref<1x1x128xf32, #tpu.memory_space<vmem>>, vector<1x1x128xf32>,
    } else {
    }
    return
  }
  func.func @transform_0(%arg0: i32, %arg1: i32) -> (i32, i32) {
    %c0_i32 = arith.constant 0 : i32
    return %arg0, %arg1 : i32, i32
  }
  func.func @transform_1(%arg0: i32, %arg1: i32) -> (i32, i32) {
    %c0_i32 = arith.constant 0 : i32
    %c0_i32_0 = arith.constant 0 : i32
    return %arg0, %c0_i32 : i32, i32
  }
  func.func @transform_2(%arg0: i32, %arg1: i32) -> (i32, i32, i32) {
    %c0_i32 = arith.constant 0 : i32
    %c0_i32_0 = arith.constant 0 : i32
    %c0_i32_1 = arith.constant 0 : i32
    return %arg0, %c0_i32, %c0_i32_0 : i32, i32, i32
  }
}

</mosaic_0001>

<bundles_post_ra>
// kernel: tpu_custom_call.1
= control target key start
LH: loop header
LB: loop body
LE: loop exit
PB: predicated region body
PF: predicated region fallthrough
CT: control target
= control target key end

     0   :  { %vm31_vm0 = vcmask 130048   ;;  %s192_s0 = inlined_call_operand.vmem [shape: f32[8,16], index: 0, kind: input, shape index: {}]   ;;  %s193_s1 = inlined_call_operand.vmem [shape: s32[8,1], index: 1, kind: input, shape index: {}]   ;;  %s194_s2 = inlined_call_operand.hbm [shape: f32[1,1,128], index: 2, kind: output, shape index: {}]  }
   0x1   :  { %v20_v0 = vld [vmem:[%s192_s0] sm:$0xff] }
   0x2   :  { %7 = vsyncpa [#allocation6], 0  ;;  %v32_v1 = vsel %vm31_vm0, %v20_v0, -inf  ;;  %vm16_vm1 = vcmask 7168   ;;  %v145_v2 = vmov -inf   ;;  %v146_v3 = vmov 0  }
   0x3   :  { %33 = vmax.xlane.f32.xlu0 %v32_v1  ;;  %17 = vst.msk [vmem:[#allocation2] sm:$0xff] %vm16_vm1, %v145_v2  ;;  %114 = vset.pattern.permute.xlu1 %v146_v3  ;;  %v21_v4 = vld [vmem:[%s193_s1] sm:$0xff]  ;;  %v147_v5 = vmov 0.0   ;;  %v23_v13 = vlaneseq  ;;  %s148_s0 = smov [#allocation5]  }
   0x4   :  { %113 = vset.pattern.permute.xlu0 %v146_v3  ;;  %28 = vperm.xlu1 %114, %v21_v4   ;;  %18 = vst.msk [vmem:[#allocation3] sm:$0xff] %vm16_vm1, %v147_v5  ;;  %19 = vst.msk [vmem:[#allocation4] sm:$0xff] %vm16_vm1, %v147_v5  ;;  %s99_s1 = sshll.u32 %s148_s0, 4  ;;  %s100_s1 = int_to_ptr.vmem [resolvable:$true] %s99_s1 }
   0x5   :  { %v24_v14 = vand.u32 127, %v23_v13  ;;  %s121_s14 = scalar_lea.vmem %s100_s1, 16  ;;  %s125_s15 = scalar_lea.vmem %s100_s1, 32 }
   0x6   :  { %p122_p0 = scmp.ne.s32.totalorder %s100_s1, %s121_s14  ;;  %p126_p1 = scmp.lt.s32.totalorder %s100_s1, %s100_s1 }
   0x7   :  { %p127_p2 = scmp.lt.s32.totalorder %s125_s15, %s121_s14 }
   0x9   :  { %p128_p3 = por %p127_p2, %p126_p1 }
   0xa   :  { %v35_v6 = vld [vmem:[#allocation2] sm:$0xff] }
   0xb   :  { %v51_v22 = vld [vmem:[#allocation3] sm:$0xff]  ;;  %v57_v26 = vld [vmem:[#allocation4] sm:$0xff]  ;;  %p129_p4 = pnand %p128_p3, %p122_p0 }
  0x83   :  { %v29_v15 = vpop.permute.xlu1 %28 }
  0x84   :  { %vm30_vm2 = vcmp.eq.s32.totalorder %v24_v14, %v29_v15 }
  0x85   :  { %v58_v17 = vsel %vm30_vm2, %v20_v0, 0.0 }
  0x86   :  { %v59_v19 = vsel %vm31_vm0, %v58_v17, 0.0 }
  0x90   :  { %v34_v7 = vpop.xlane.xlu0 %33 }
  0x91   :  { %v36_v8 = vmax.f32 %v35_v6, %v34_v7 }
  0x93   :  { %v48_v9 = vsub.f32 %v35_v6, %v36_v8  ;;  %56 = vst.msk [vmem:[#allocation2] sm:$0xff] %vm16_vm1, %v36_v8  ;;  %39 = vperm.xlu0 %113, %v36_v8  }
  0x95   :  { %v49_v20 = vmul.f32 1.442695, %v48_v9 }
  0x9a   :  { %v67_v32 = vld [vmem:[#allocation2] sm:$0xff] }
 0x112   :  { %v40_v10 = vpop.permute.xlu0 %39 }
 0x113   :  { %v42_v11 = vsub.f32 %v20_v0, %v40_v10 }
 0x115   :  { %v43_v12 = vmul.f32 1.442695, %v42_v11 }
 0x117   :  { %115 = vpow2.f32 %v43_v12 }
 0x118   :  { %117 = vpow2.f32 %v49_v20 }
 0x121   :  { %v116_v16 = vpop.eup %115 }
 0x122   :  { %v45_v18 = vsel %vm31_vm0, %v116_v16, 0.0  ;;  %v118_v21 = vpop.eup %117 }
 0x123   :  { %46 = vadd.xlane.f32.xlu1 %v45_v18  ;;  %v52_v23 = vmul.f32 %v118_v21, %v51_v22 }
 0x127   :  { %60 = vadd.xlane.f32.xlu1 %v59_v19 }
 0x1b0   :  { %v47_v24 = vpop.xlane.xlu1 %46 }
 0x1b1   :  { %v53_v25 = vadd.f32 %v52_v23, %v47_v24 }
 0x1b3   :  { %55 = vst.msk [vmem:[#allocation3] sm:$0xff] %vm16_vm1, %v53_v25 }
 0x1b4   :  { %v61_v27 = vpop.xlane.xlu1 %60 }
 0x1b5   :  { %v62_v28 = vadd.f32 %v61_v27, %v57_v26 }
 0x1b7   :  { %63 = vst.msk [vmem:[#allocation4] sm:$0xff] %vm16_vm1, %v62_v28 }
 0x1ba   :  { %v68_v29 = vld [vmem:[#allocation3] sm:$0xff] }
 0x1bb   :  { %119 = vlog2.f32 %v68_v29 }
 0x1be   :  { %v72_v33 = vld [vmem:[#allocation4] sm:$0xff] }
 0x1c5   :  { %v120_v30 = vpop.eup %119 }
 0x1c6   :  { %v70_v31 = vmul.f32 0.6931472, %v120_v30 }
 0x1c8   :  { %v71_v34 = vadd.f32 %v70_v31, %v67_v32 }
 0x1ca   :  { %v73_v35 = vsub.f32 %v71_v34, %v72_v33 }
 0x1cc   :  { %v81_v36 = vsel %vm16_vm1, %v73_v35, 0.0 }
 0x1cd   :  { %82 = vadd.xlane.f32.xlu1 %v81_v36 }
 0x25a   :  { %v83_v37 = vpop.xlane.xlu1 %82 }
 0x25b   :  { %v84_v38 = vrot.slane %v83_v37, 4 }
 0x25d   :  { %v85_v39 = vadd.f32 %v84_v38, %v83_v37 }
 0x25f   :  { %v86_v40 = vrot.slane %v85_v39, 2 }
 0x261   :  { %v87_v41 = vadd.f32 %v86_v40, %v85_v39 }
 0x263   :  { %v88_v42 = vrot.slane %v87_v41, 1 }
 0x265   :  { %v89_v43 = vadd.f32 %v88_v42, %v87_v41 }
 0x267   :  { %107 = vpush %v89_v43 }
 0x298   :  { %s108_s13 = spop %107 }
 0x299   :  { %v91_v44 = vstv %s108_s13 }
 0x29a   :  { %92 = vst [vmem:[#allocation5] sm:$0x1] %v91_v44 }
 0x29b   :  { %132 = shalt.err (!%p129_p4)
}
 0x29c   :  { %s133_s18 = scalar_lea.hbm %s194_s2, 16 }
 0x29d   :  { %p134_p5 = scmp.ne.s32.totalorder %s194_s2, %s133_s18  ;;  %p137_p6 = scmp.lt.u32.totalorder %s133_s18, %s194_s2 }
 0x29f   :  { %p139_p7 = pnand %p137_p6, %p134_p5 }
 0x2a1   :  { %142 = shalt.err (!%p139_p7)
}
 0x2a2   :  { %102 = dma.vmem_to_hbm [thread:$0]  %s100_s1, 16, %s194_s2, [#allocation6]  }
 0x2a3   :  { %143 = dma.done.wait [#allocation6], 16  }
 0x2a4   :  { %144 = vsyncadd [#allocation6], 4294967280 }
 0x2a5   :  { %106 = vsyncpa [#allocation6], 1 }

</bundles_post_ra>
